<compile_context>
chip_gen: v6e
topology: v6e:2x2x1
jax: 0.10.0
libtpu: 0.0.40
codegen_flags: <defaults>
</compile_context>

<pallas_src>
import functools

import jax
import jax.numpy as jnp
from jax.experimental import pallas as pl
from jax.experimental.pallas import tpu as pltpu


def _distill_ce_kernel(x_ref, t_ref, o_ref, *, inv_t, n_valid, tm):
    """One grid step: partial distillation-CE sum over a (tm, C) row block."""
    i = pl.program_id(0)

    @pl.when(i == 0)
    def _init():
        o_ref[...] = jnp.zeros_like(o_ref)

    # Compute in f32 (PyTorch keeps the softmax math in f32 for f32 inputs).
    x = x_ref[...].astype(jnp.float32) * inv_t          # (tm, C) student logits / T
    t = t_ref[...].astype(jnp.float32) * inv_t          # (tm, C) teacher logits / T

    # Student: numerically stable row-wise log-softmax.
    x_max = jnp.max(x, axis=-1, keepdims=True)
    x_sh = x - x_max
    lse = jnp.log(jnp.sum(jnp.exp(x_sh), axis=-1, keepdims=True))
    log_q = x_sh - lse                                   # log_softmax(inputs / T)

    # Teacher: numerically stable row-wise softmax.
    # Per-row scalar reciprocal + broadcast multiply (no per-element divide).
    t_max = jnp.max(t, axis=-1, keepdims=True)
    t_exp = jnp.exp(t - t_max)
    p = t_exp * (1.0 / jnp.sum(t_exp, axis=-1, keepdims=True))

    # Per-row loss: -sum_c p_c * log_q_c
    row_loss = -jnp.sum(log_q * p, axis=-1, keepdims=True)   # (tm, 1)

    # Mask rows that came from zero-padding of a ragged last block.
    row_idx = i * tm + jax.lax.broadcasted_iota(jnp.int32, row_loss.shape, 0)
    row_loss = jnp.where(row_idx < n_valid, row_loss, 0.0)

    # Accumulate the block's partial sum into the resident scalar output.
    o_ref[...] += jnp.sum(row_loss, keepdims=True)            # (1, 1)


def _choose_block_rows(n_rows, n_cols, itemsize, target_bytes=2 * 1024 * 1024):
    """Pick a row-block size targeting ~2 MiB per input block."""
    rows = target_bytes // max(1, n_cols * itemsize)
    if rows >= n_rows:
        return n_rows                      # one block covers all rows
    return max(8, int(rows) // 8 * 8)      # multiple of 8 (sublane-aligned)


def distill_cross_entropy(inputs, target, T, *, block_rows=None):
    """inputs, target: (N, C) logits. Returns scalar f32 loss."""
    assert inputs.ndim == 2 and inputs.shape == target.shape
    n, c = inputs.shape
    itemsize = inputs.dtype.itemsize

    if block_rows is None:
        tm = _choose_block_rows(n, c, itemsize)
    else:
        tm = min(int(block_rows), n)
        if tm < n:
            tm = max(8, tm // 8 * 8)

    # Pad rows up to a multiple of tm; padded rows are masked out in-kernel.
    if n % tm != 0:
        pad = (-n) % tm
        inputs = jnp.pad(inputs, ((0, pad), (0, 0)))
        target = jnp.pad(target, ((0, pad), (0, 0)))
    n_padded = inputs.shape[0]
    grid = (n_padded // tm,)

    kernel = functools.partial(
        _distill_ce_kernel, inv_t=1.0 / float(T), n_valid=n, tm=tm
    )

    total = pl.pallas_call(
        kernel,
        out_shape=jax.ShapeDtypeStruct((1, 1), jnp.float32),
        grid_spec=pltpu.PrefetchScalarGridSpec(
            num_scalar_prefetch=0,
            grid=grid,
            in_specs=[
                pl.BlockSpec((tm, c), lambda i: (i, 0)),   # inputs row block
                pl.BlockSpec((tm, c), lambda i: (i, 0)),   # target row block
            ],
            out_specs=pl.BlockSpec((1, 1), lambda i: (0, 0)),  # resident accumulator
        ),
        compiler_params=pltpu.CompilerParams(
            dimension_semantics=("arbitrary",),   # reduction axis
        ),
    )(inputs, target)

    # loss = total_sum / sample_num (original, un-padded N)
    return total[0, 0] / n


def _ref_loss(x, t, temp):
    log_likelihood = -jax.nn.log_softmax(x / temp, axis=1)
    p = jax.nn.softmax(t / temp, axis=1)
    return jnp.sum(log_likelihood * p) / x.shape[0]


if __name__ == "__main__":
    key = jax.random.PRNGKey(0)
    k1, k2, k3, k4 = jax.random.split(key, 4)
    T = 4.0

    # Small shapes consistent with the module: sample_num=8, class_num=32.
    N, C = 8, 32
    inputs = jax.random.normal(k1, (N, C), dtype=jnp.float32)
    target = jax.random.normal(k2, (N, C), dtype=jnp.float32)

    loss = jax.block_until_ready(distill_cross_entropy(inputs, target, T))
    ref = _ref_loss(inputs, target, T)
    assert jnp.allclose(loss, ref, atol=1e-5, rtol=1e-5), (loss, ref)

    # Also exercise the multi-block path (row tiling + masked ragged tail).
    N2, C2 = 20, 32
    x2 = jax.random.normal(k3, (N2, C2), dtype=jnp.float32)
    t2 = jax.random.normal(k4, (N2, C2), dtype=jnp.float32)
    loss2 = jax.block_until_ready(distill_cross_entropy(x2, t2, T, block_rows=8))
    ref2 = _ref_loss(x2, t2, T)
    assert jnp.allclose(loss2, ref2, atol=1e-5, rtol=1e-5), (loss2, ref2)

    print("KERNEL_OK")
</pallas_src>

<mosaic_0001>
module attributes {stable_mosaic.version = 11 : i64} {
  func.func @_distill_ce_kernel(%arg0: i32, %arg1: memref<8x32xf32, #tpu.memory_space<vmem>>, %arg2: memref<8x32xf32, #tpu.memory_space<vmem>>, %arg3: memref<1x1xf32, #tpu.memory_space<vmem>>) attributes {dimension_semantics = [#tpu.dimension_semantics<arbitrary>], iteration_bounds = array<i64: 1>, scalar_prefetch = 0 : i64, scratch_operands = 0 : i64, tpu.core_type = #tpu.core_type<tc>, window_params = [{transform_indices = @transform_0, window_bounds = array<i64: 8, 32>}, {transform_indices = @transform_1, window_bounds = array<i64: 8, 32>}, {pipeline_mode = #tpu.pipeline_mode<synchronous>, transform_indices = @transform_2, window_bounds = array<i64: 1, 1>}]} {
    %c0_i32 = arith.constant 0 : i32
    %0 = arith.cmpi eq, %arg0, %c0_i32 : i32
    %1 = arith.extui %0 : i1 to i32
    %c0_i32_0 = arith.constant 0 : i32
    %2 = arith.cmpi ne, %1, %c0_i32_0 : i32
    scf.if %2 {
      %cst_19 = arith.constant 0.000000e+00 : f32
      %51 = vector.broadcast %cst_19 : f32 to vector<1x1xf32>
      %c0_20 = arith.constant 0 : index
      %c0_21 = arith.constant 0 : index
      %52 = vector.load %arg3[%c0_20, %c0_21] : memref<1x1xf32, #tpu.memory_space<vmem>>, vector<1x1xf32>
      tpu.vector_store %arg3[%c0_20, %c0_21], %51 {strides = array<i32>} : memref<1x1xf32, #tpu.memory_space<vmem>>, vector<1x1xf32>,
    } else {
    }
    %c0 = arith.constant 0 : index
    %c0_1 = arith.constant 0 : index
    %3 = vector.load %arg1[%c0, %c0_1] : memref<8x32xf32, #tpu.memory_space<vmem>>, vector<8x32xf32>
    %cst = arith.constant 2.500000e-01 : f32
    %4 = vector.broadcast %cst : f32 to vector<8x32xf32>
    %5 = arith.mulf %3, %4 : vector<8x32xf32>
    %c0_2 = arith.constant 0 : index
    %c0_3 = arith.constant 0 : index
    %6 = vector.load %arg2[%c0_2, %c0_3] : memref<8x32xf32, #tpu.memory_space<vmem>>, vector<8x32xf32>
    %cst_4 = arith.constant 2.500000e-01 : f32
    %7 = vector.broadcast %cst_4 : f32 to vector<8x32xf32>
    %8 = arith.mulf %6, %7 : vector<8x32xf32>
    %cst_5 = arith.constant dense<0xFF800000> : vector<8xf32>
    %9 = vector.multi_reduction <maximumf>, %5, %cst_5 [1] : vector<8x32xf32> to vector<8xf32>
    %10 = vector.shape_cast %9 : vector<8xf32> to vector<8x1xf32>
    %11 = vector.broadcast %10 : vector<8x1xf32> to vector<8x32xf32>
    %12 = arith.subf %5, %11 : vector<8x32xf32>
    %13 = math.exp %12 : vector<8x32xf32>
    %cst_6 = arith.constant dense<0.000000e+00> : vector<8xf32>
    %14 = vector.multi_reduction <add>, %13, %cst_6 [1] : vector<8x32xf32> to vector<8xf32>
    %15 = vector.shape_cast %14 : vector<8xf32> to vector<8x1xf32>
    %16 = math.log %15 : vector<8x1xf32>
    %17 = vector.broadcast %16 : vector<8x1xf32> to vector<8x32xf32>
    %18 = arith.subf %12, %17 : vector<8x32xf32>
    %cst_7 = arith.constant dense<0xFF800000> : vector<8xf32>
    %19 = vector.multi_reduction <maximumf>, %8, %cst_7 [1] : vector<8x32xf32> to vector<8xf32>
    %20 = vector.shape_cast %19 : vector<8xf32> to vector<8x1xf32>
    %21 = vector.broadcast %20 : vector<8x1xf32> to vector<8x32xf32>
    %22 = arith.subf %8, %21 : vector<8x32xf32>
    %23 = math.exp %22 : vector<8x32xf32>
    %cst_8 = arith.constant dense<0.000000e+00> : vector<8xf32>
    %24 = vector.multi_reduction <add>, %23, %cst_8 [1] : vector<8x32xf32> to vector<8xf32>
    %25 = vector.shape_cast %24 : vector<8xf32> to vector<8x1xf32>
    %cst_9 = arith.constant 1.000000e+00 : f32
    %26 = vector.broadcast %cst_9 : f32 to vector<8x1xf32>
    %27 = arith.divf %26, %25 : vector<8x1xf32>
    %28 = vector.broadcast %27 : vector<8x1xf32> to vector<8x32xf32>
    %29 = arith.mulf %23, %28 : vector<8x32xf32>
    %30 = arith.mulf %18, %29 : vector<8x32xf32>
    %cst_10 = arith.constant dense<0.000000e+00> : vector<8xf32>
    %31 = vector.multi_reduction <add>, %30, %cst_10 [1] : vector<8x32xf32> to vector<8xf32>
    %32 = vector.shape_cast %31 : vector<8xf32> to vector<8x1xf32>
    %cst_11 = arith.constant 0.000000e+00 : f32
    %33 = vector.broadcast %cst_11 : f32 to vector<8x1xf32>
    %34 = arith.subf %33, %32 : vector<8x1xf32>
    %c8_i32 = arith.constant 8 : i32
    %35 = arith.muli %arg0, %c8_i32 : i32
    %36 = tpu.iota {dimensions = array<i32: 0>} : vector<8x1xi32>
    %37 = vector.broadcast %35 : i32 to vector<8x1xi32>
    %38 = arith.addi %37, %36 : vector<8x1xi32>
    %c8_i32_12 = arith.constant 8 : i32
    %39 = vector.broadcast %c8_i32_12 : i32 to vector<8x1xi32>
    %40 = arith.cmpi slt, %38, %39 : vector<8x1xi32>
    %cst_13 = arith.constant 0.000000e+00 : f32
    %41 = vector.broadcast %cst_13 : f32 to vector<8x1xf32>
    %42 = arith.select %40, %34, %41 : vector<8x1xi1>, vector<8x1xf32>
    %c0_14 = arith.constant 0 : index
    %c0_15 = arith.constant 0 : index
    %43 = vector.load %arg3[%c0_14, %c0_15] : memref<1x1xf32, #tpu.memory_space<vmem>>, vector<1x1xf32>
    %44 = vector.shape_cast %42 : vector<8x1xf32> to vector<1x8x1xf32>
    %cst_16 = arith.constant dense<0.000000e+00> : vector<1xf32>
    %45 = vector.multi_reduction <add>, %44, %cst_16 [1, 2] : vector<1x8x1xf32> to vector<1xf32>
    %46 = vector.shape_cast %45 : vector<1xf32> to vector<1x1x1xf32>
    %47 = vector.extract %46[0, 0, 0] : f32 from vector<1x1x1xf32>
    %48 = vector.broadcast %47 : f32 to vector<1x1xf32>
    %49 = arith.addf %43, %48 : vector<1x1xf32>
    %c0_17 = arith.constant 0 : index
    %c0_18 = arith.constant 0 : index
    %50 = vector.load %arg3[%c0_17, %c0_18] : memref<1x1xf32, #tpu.memory_space<vmem>>, vector<1x1xf32>
    tpu.vector_store %arg3[%c0_17, %c0_18], %49 {strides = array<i32>} : memref<1x1xf32, #tpu.memory_space<vmem>>, vector<1x1xf32>,
    return
  }
  func.func @transform_0(%arg0: i32) -> (i32, i32) {
    %c0_i32 = arith.constant 0 : i32
    %c0_i32_0 = arith.constant 0 : i32
    return %arg0, %c0_i32 : i32, i32
  }
  func.func @transform_1(%arg0: i32) -> (i32, i32) {
    %c0_i32 = arith.constant 0 : i32
    %c0_i32_0 = arith.constant 0 : i32
    return %arg0, %c0_i32 : i32, i32
  }
  func.func @transform_2(%arg0: i32) -> (i32, i32) {
    %c0_i32 = arith.constant 0 : i32
    %c0_i32_0 = arith.constant 0 : i32
    %c0_i32_1 = arith.constant 0 : i32
    return %c0_i32, %c0_i32_0 : i32, i32
  }
}

</mosaic_0001>

<bundles_post_ra>
// kernel: tpu_custom_call.1
= control target key start
LH: loop header
LB: loop body
LE: loop exit
PB: predicated region body
PF: predicated region fallthrough
CT: control target
= control target key end

     0   :  { %7 = vsyncpa [#allocation3], 0  ;;  %s230_s0 = inlined_call_operand.hbm [shape: f32[8,32], index: 0, kind: input, shape index: {}]   ;;  %s231_s1 = inlined_call_operand.hbm [shape: f32[8,32], index: 1, kind: input, shape index: {}]   ;;  %s232_s2 = inlined_call_operand.hbm [shape: f32[1,1], index: 2, kind: output, shape index: {}]  }
   0x1   :  { %8 = vsyncpa [#allocation6], 0 }
   0x2   :  { %9 = vsyncpa [#allocation4], 0  ;;  %s195_s9 = smov [#allocation2]   ;;  %s196_s11 = smov [#allocation5]  }
   0x3   :  { %s16_s10 = sshll.u32 %s195_s9, 4  ;;  %s26_s12 = sshll.u32 %s196_s11, 4  ;;  %s17_s10 = int_to_ptr.vmem [resolvable:$true] %s16_s10  ;;  %s27_s12 = int_to_ptr.vmem [resolvable:$true] %s26_s12 }
   0x4   :  { %s137_s13 = scalar_lea.vmem %s17_s10, 128  ;;  %p142_p1 = scmp.lt.s32.totalorder %s17_s10, %s17_s10 }
   0x5   :  { %p138_p0 = scmp.ne.s32.totalorder %s17_s10, %s137_s13  ;;  %p143_p2 = scmp.lt.s32.totalorder %s137_s13, %s137_s13 }
   0x7   :  { %p144_p3 = por %p143_p2, %p142_p1 }
   0x9   :  { %p145_p4 = pnand %p144_p3, %p138_p0 }
   0xb   :  { %148 = shalt.err (!%p145_p4)
}
   0xc   :  { %19 = dma.hbm_to_vmem [thread:$0]  %s230_s0, 128, %s17_s10, [#allocation3]  }
   0xd   :  { %s157_s16 = scalar_lea.vmem %s27_s12, 128  ;;  %p162_p6 = scmp.lt.s32.totalorder %s27_s12, %s27_s12 }
   0xe   :  { %p158_p5 = scmp.ne.s32.totalorder %s27_s12, %s157_s16  ;;  %p163_p7 = scmp.lt.s32.totalorder %s157_s16, %s157_s16 }
  0x10   :  { %p164_p8 = por %p163_p7, %p162_p6 }
  0x12   :  { %p165_p9 = pnand %p164_p8, %p158_p5 }
  0x14   :  { %168 = shalt.err (!%p165_p9)
}
  0x15   :  { %29 = dma.hbm_to_vmem [thread:$0]  %s231_s1, 128, %s27_s12, [#allocation6]  }
  0x16   :  { %189 = dma.done.wait [#allocation3], 128  }
  0x17   :  { %190 = vsyncadd [#allocation3], 4294967168 }
  0x18   :  { %191 = dma.done.wait [#allocation6], 128  }
  0x19   :  { %192 = vsyncadd [#allocation6], 4294967168  ;;  %vm40_vm0 = vcmask 0   ;;  %v197_v0 = vmov 0.0   ;;  %v42_v1 = vld [vmem:[#allocation2] sm:$0xff]  ;;  %vm46_vm1 = vcmask 261120  }
  0x1a   :  { %41 = vst.msk [vmem:[#allocation7] sm:$0x1] %vm40_vm0, %v197_v0  ;;  %v44_v2 = vld [vmem:[#allocation5] sm:$0xff]  ;;  %v43_v3 = vmul.f32 0.25, %v42_v1  ;;  %vm84_vm2 = vcmask 7168   ;;  %s198_s0 = smov [#allocation7]  }
  0x1b   :  { %v45_v4 = vmul.f32 0.25, %v44_v2  ;;  %s105_s1 = sshll.u32 %s198_s0, 4  ;;  %s106_s1 = int_to_ptr.vmem [resolvable:$true] %s105_s1 }
  0x1c   :  { %v47_v5 = vsel %vm46_vm1, %v43_v3, -inf  ;;  %s169_s20 = scalar_lea.vmem %s106_s1, 16  ;;  %s173_s21 = scalar_lea.vmem %s106_s1, 32 }
  0x1d   :  { %48 = vmax.xlane.f32.xlu0 %v47_v5  ;;  %v59_v6 = vsel %vm46_vm1, %v45_v4, -inf  ;;  %p170_p10 = scmp.ne.s32.totalorder %s106_s1, %s169_s20  ;;  %p174_p11 = scmp.lt.s32.totalorder %s106_s1, %s106_s1 }
  0x1e   :  { %p175_p12 = scmp.lt.s32.totalorder %s173_s21, %s169_s20 }
  0x20   :  { %p176_p13 = por %p175_p12, %p174_p11 }
  0x21   :  { %60 = vmax.xlane.f32.xlu0 %v59_v6  ;;  %v83_v36 = vld [vmem:[#allocation7] sm:$0x1] }
  0x22   :  { %p177_p0 = pnand %p176_p13, %p170_p10 }
  0xa6   :  { %v49_v7 = vpop.xlane.xlu0 %48 }
  0xa7   :  { %v50_v8 = vsub.f32 %v43_v3, %v49_v7 }
  0xa9   :  { %v51_v9 = vmul.f32 1.442695, %v50_v8 }
  0xaa   :  { %v61_v10 = vpop.xlane.xlu0 %60 }
  0xab   :  { %121 = vpow2.f32 %v51_v9  ;;  %v62_v11 = vsub.f32 %v45_v4, %v61_v10 }
  0xad   :  { %v63_v12 = vmul.f32 1.442695, %v62_v11 }
  0xaf   :  { %123 = vpow2.f32 %v63_v12 }
  0xb8   :  { %v122_v13 = vpop.eup %121 }
  0xb9   :  { %v53_v14 = vsel %vm46_vm1, %v122_v13, 0.0 }
  0xba   :  { %54 = vadd.xlane.f32.xlu1 %v53_v14 }
  0xbc   :  { %v124_v15 = vpop.eup %123 }
  0xbd   :  { %v65_v16 = vsel %vm46_vm1, %v124_v15, 0.0 }
  0xbe   :  { %66 = vadd.xlane.f32.xlu1 %v65_v16 }
 0x143   :  { %v55_v17 = vpop.xlane.xlu1 %54 }
 0x144   :  { %125 = vlog2.f32 %v55_v17 }
 0x147   :  { %v67_v18 = vpop.xlane.xlu1 %66 }
 0x148   :  { %127 = vrcp.f32 %v67_v18 }
 0x151   :  { %v126_v19 = vpop.eup %125 }
 0x152   :  { %v57_v20 = vmul.f32 0.6931472, %v126_v19 }
 0x154   :  { %v58_v22 = vsub.f32 %v50_v8, %v57_v20 }
 0x155   :  { %v128_v21 = vpop.eup %127 }
 0x156   :  { %v70_v23 = vmul.f32 %v128_v21, %v124_v15 }
 0x158   :  { %v71_v24 = vmul.f32 %v70_v23, %v58_v22 }
 0x15a   :  { %v72_v25 = vsel %vm46_vm1, %v71_v24, 0.0 }
 0x15b   :  { %73 = vadd.xlane.f32.xlu0 %v72_v25 }
 0x1e4   :  { %v74_v26 = vpop.xlane.xlu0 %73 }
 0x1e5   :  { %v75_v27 = vsub.f32 0.0, %v74_v26 }
 0x1e7   :  { %v85_v28 = vsel %vm84_vm2, %v75_v27, 0.0 }
 0x1e8   :  { %86 = vadd.xlane.f32.xlu1 %v85_v28 }
 0x271   :  { %v87_v29 = vpop.xlane.xlu1 %86 }
 0x272   :  { %v88_v30 = vrot.slane %v87_v29, 4 }
 0x274   :  { %v89_v31 = vadd.f32 %v88_v30, %v87_v29 }
 0x276   :  { %v90_v32 = vrot.slane %v89_v31, 2 }
 0x278   :  { %v91_v33 = vadd.f32 %v90_v32, %v89_v31 }
 0x27a   :  { %v92_v34 = vrot.slane %v91_v33, 1 }
 0x27c   :  { %v93_v35 = vadd.f32 %v92_v34, %v91_v33 }
 0x27e   :  { %115 = vpush %v93_v35 }
 0x2af   :  { %s116_s19 = spop %115 }
 0x2b0   :  { %v95_v37 = vstv %s116_s19 }
 0x2b1   :  { %v96_v38 = vadd.f32 %v95_v37, %v83_v36 }
 0x2b3   :  { %98 = vst.msk [vmem:[#allocation7] sm:$0x1] %vm40_vm0, %v96_v38 }
 0x2b4   :  { %180 = shalt.err (!%p177_p0)
}
 0x2b5   :  { %108 = dma.vmem_to_hbm [thread:$0]  %s106_s1, 16, %s232_s2, [#allocation4]  }
 0x2b6   :  { %193 = dma.done.wait [#allocation4], 16  }
 0x2b7   :  { %194 = vsyncadd [#allocation4], 4294967280 }
 0x2b8   :  { %112 = vsyncpa [#allocation3], 1 }
 0x2b9   :  { %113 = vsyncpa [#allocation6], 1 }
 0x2ba   :  { %114 = vsyncpa [#allocation4], 1 }

</bundles_post_ra>
